<compile_context>
chip_gen: v6e
topology: v6e:2x2x1
jax: 0.10.0
libtpu: 0.0.40
codegen_flags: <defaults>
</compile_context>

<pallas_src>
import functools
import numpy as np
import jax
import jax.numpy as jnp
from jax.experimental import pallas as pl
from jax.experimental.pallas import tpu as pltpu


# ----------------------------------------------------------------------------
# Deterministic weight construction (mirrors build_base_matrix_1d + iDft1d init)
# ----------------------------------------------------------------------------
def build_base_matrix_1d(in_features, redundance=True, forward=True):
    signal_out = in_features if redundance else 2 * in_features
    n = np.arange(signal_out, dtype=np.float64).reshape(-1, 1)
    k = np.arange(in_features, dtype=np.float64).reshape(1, -1)
    sign = -1.0 if forward else 1.0          # inverse DFT -> positive exponent
    return sign * 2.0 * np.pi * n * k / float(signal_out)


def create_idft_weights(in_features, redundance=True):
    """(T_real, T_imag) as numpy [F_out, in_features] float32 (torch params)."""
    signal_out = in_features if redundance else 2 * in_features
    X_base = build_base_matrix_1d(in_features, redundance=redundance, forward=False)
    T_real = ((1.0 / signal_out) * np.cos(X_base)).astype(np.float32)
    T_imag = ((1.0 / signal_out) * np.sin(X_base)).astype(np.float32)
    return T_real, T_imag


def create_idft_weight_stack(in_features, redundance=True, dtype=jnp.float32):
    """Fused weight stack, built ONCE host-side.

    Returns (w_stack [2, 2, W, F_out], F_out) with
      w_stack[0] = ( Wr^T, -Wi^T )  -> real output columns
      w_stack[1] = ( Wi^T,  Wr^T )  -> imag output columns
    so  real = r @ Wr^T - im @ Wi^T ,  imag = r @ Wi^T + im @ Wr^T.
    `dtype=jnp.bfloat16` halves the slab and boosts MXU throughput on
    v6e/v7x at ~1e-3 relative accuracy (default stays fp32 for exactness).
    """
    T_real, T_imag = create_idft_weights(in_features, redundance)
    f_out, w = T_real.shape
    wk = np.zeros((2, 2, w, f_out), dtype=np.float32)
    wk[0, 0] = T_real.T
    wk[0, 1] = -T_imag.T
    wk[1, 0] = T_imag.T
    wk[1, 1] = T_real.T
    return jnp.asarray(wk, dtype=dtype), f_out


# ----------------------------------------------------------------------------
# Hardware-aware sizing helpers
# ----------------------------------------------------------------------------
def _vmem_capacity_bytes():
    try:
        info = pltpu.get_tpu_info()
        cap = getattr(info, "vmem_capacity_bytes", None)
        if cap:
            return int(cap)
    except Exception:
        pass
    return 64 << 20            # conservative default (v7x per-core)


def _pick_f_tile(f_out, w_in, cap_bytes, wbytes):
    """Output-column tile for the weight / output; full F_out when it fits."""
    def chunk(f):               # one [2, 2, W, f] weight chunk
        return 2 * 2 * w_in * f * wbytes
    if f_out % 128 != 0:
        return f_out            # full-extent last dim is legal; typically small
    if 2 * chunk(f_out) <= cap_bytes // 3:
        return f_out            # whole slab comfortably VMEM-resident
    for cand in (2048, 1024, 512, 256, 128):
        if f_out % cand == 0 and 2 * chunk(cand) <= cap_bytes // 3:
            return cand
    return 128 if f_out % 128 == 0 else f_out


# ----------------------------------------------------------------------------
# Pallas kernel: per (batch-block, channel-pair, column-chunk) complex matmul
# ----------------------------------------------------------------------------
def _idft1d_kernel(mode, p1_ref, p2_ref, r_ref, i_ref, w_ref, o_ref):
    del p1_ref, p2_ref                       # channel gather done in index_maps
    bt, h, w_in = r_ref.shape                # (batch_tile, H, W)
    f_tile = o_ref.shape[-1]

    # (bt, H, W) -> (bt*H, W): pure sublane relabeling (bt==1 or H % 8 == 0).
    r = r_ref[...].reshape(bt * h, w_in)
    im = i_ref[...].reshape(bt * h, w_in)

    if mode == "amp":
        # amp/phase -> real/imag.  NOTE: cos/sin are VPU polynomial work (not a
        # single EUP op); if a bundle dump shows VALU-bound at large W this is
        # where to interleave trig on K sub-tiles with the dots.
        amp, phase = r, im
        r = amp * jnp.cos(phase)
        im = amp * jnp.sin(phase)

    if w_ref.dtype != r.dtype:               # optional bf16 weight path
        r = r.astype(w_ref.dtype)
        im = im.astype(w_ref.dtype)

    # Real half: compute and store immediately (halves live f32 intermediates).
    real = (jnp.dot(r, w_ref[0, 0], preferred_element_type=jnp.float32)
            + jnp.dot(im, w_ref[0, 1], preferred_element_type=jnp.float32))
    o_ref[:, 0, :, :] = real.reshape(bt, h, f_tile).astype(o_ref.dtype)

    imag = (jnp.dot(r, w_ref[1, 0], preferred_element_type=jnp.float32)
            + jnp.dot(im, w_ref[1, 1], preferred_element_type=jnp.float32))
    o_ref[:, 1, :, :] = imag.reshape(bt, h, f_tile).astype(o_ref.dtype)


def idft1d_forward(x, w_stack, pos1, pos2, mode="complex"):
    """Pallas implementation of iDft1d.forward.

    x       : [B, C, H, W] float32, W == in_features
    w_stack : [2, 2, W, F_out] fused weight stack (create_idft_weight_stack)
    returns : [B, 2*len(pos1), H, F_out]
    """
    if mode not in ("complex", "amp"):
        raise AttributeError(
            "'mode' should be 'complex' or 'amp' while %s was found!" % str(mode))

    B, C, H, W = x.shape
    assert w_stack.shape[:3] == (2, 2, W), "weight / input W mismatch"
    f_out = int(w_stack.shape[3])
    P = len(pos1)
    p1 = jnp.asarray(pos1, dtype=jnp.int32)
    p2 = jnp.asarray(pos2, dtype=jnp.int32)

    wbytes = jnp.dtype(w_stack.dtype).itemsize
    phys = _vmem_capacity_bytes()
    cap = max(phys - (16 << 20), phys // 2)          # gen-aware scoped-VMEM cap

    f_tile = _pick_f_tile(f_out, W, cap, wbytes)
    nf = f_out // f_tile

    # Rows per grid step = bt * H (block over batch); generation-aware target.
    row_target = 1024 if phys >= (96 << 20) else 384
    bt = 1
    if H % 8 == 0:            # keep the (bt,H) -> (bt*H) collapse layout-trivial
        for d in range(1, B + 1):
            if B % d == 0 and d * H <= row_target:
                bt = d
    # Keep at least 2 grid steps so input/output DMAs can pipeline.
    while bt > 1 and (B // bt) * P * nf < 2:
        bt //= 2
        while B % bt:
            bt -= 1
    nb = B // bt
    grid = (nb, P, nf)        # column-chunk axis innermost -> weight streams,
                              # activation block is reused across it (no refetch)

    # VMEM budget: double-buffered in/out tiles + weight chunk + kernel temps.
    in_tile = bt * H * W * 4
    out_tile = bt * 2 * H * f_tile * 4
    w_chunk = 2 * 2 * W * f_tile * wbytes
    temps = bt * H * 2 * W * 4 + 2 * bt * H * f_tile * 4
    need = 2 * (2 * in_tile + out_tile + w_chunk) + temps + (4 << 20)
    vmem_limit = int(min(max(need, 32 << 20), cap))

    kernel = functools.partial(_idft1d_kernel, mode)

    out = pl.pallas_call(
        kernel,
        out_shape=jax.ShapeDtypeStruct((B, 2, P, H, f_out), jnp.float32),
        grid_spec=pltpu.PrefetchScalarGridSpec(
            num_scalar_prefetch=2,
            grid=grid,
            in_specs=[
                # real (or amplitude) channels: gathered via prefetched pos1
                pl.BlockSpec((bt, None, H, W),
                             lambda b, p, f, p1r, p2r: (b, p1r[p], 0, 0)),
                # imag (or phase) channels: gathered via prefetched pos2
                pl.BlockSpec((bt, None, H, W),
                             lambda b, p, f, p1r, p2r: (b, p2r[p], 0, 0)),
                # fused weight stack: column chunk f (constant when nf == 1)
                pl.BlockSpec((2, 2, W, f_tile),
                             lambda b, p, f, p1r, p2r: (0, 0, 0, f)),
            ],
            out_specs=pl.BlockSpec((bt, 2, None, H, f_tile),
                                   lambda b, p, f, p1r, p2r: (b, 0, p, 0, f)),
        ),
        compiler_params=pltpu.CompilerParams(
            dimension_semantics=("parallel", "parallel", "parallel"),
            vmem_limit_bytes=vmem_limit),
    )(p1, p2, x, x, w_stack)

    # [B, 2, P, H, F] -> [B, 2P, H, F]: the original torch.cat along channels
    # is a free reshape (adjacent-dim collapse, no copy, no padding to slice).
    return out.reshape(B, 2 * P, H, f_out)


# ----------------------------------------------------------------------------
# Pure-JAX reference for verification
# ----------------------------------------------------------------------------
def idft1d_reference(x, wr, wi, pos1, pos2, mode="complex"):
    r = jnp.take(x, jnp.asarray(pos1), axis=1)
    im = jnp.take(x, jnp.asarray(pos2), axis=1)
    if mode == "amp":
        r, im = r * jnp.cos(im), r * jnp.sin(im)
    rp = jnp.einsum("bphw,fw->bphf", r, wr) - jnp.einsum("bphw,fw->bphf", im, wi)
    ip = jnp.einsum("bphw,fw->bphf", r, wi) + jnp.einsum("bphw,fw->bphf", im, wr)
    return jnp.concatenate([rp, ip], axis=1)


if __name__ == "__main__":
    # Small deterministic example consistent with the module: NCHW input, the
    # transform acts on the last axis W == in_features; pos selects which
    # channels carry the real/imag (or amp/phase) components.
    B, C, H, W = 2, 4, 16, 16
    in_features = W
    pos1 = (0, 1)   # real (or amplitude) channels
    pos2 = (2, 3)   # imag (or phase)  channels

    key = jax.random.PRNGKey(0)
    x = jax.random.normal(key, (B, C, H, W), dtype=jnp.float32)

    # Fused weight stack built once host-side (the layer's parameters).
    w_stack, f_out = create_idft_weight_stack(in_features, redundance=True)
    wr_np, wi_np = create_idft_weights(in_features, redundance=True)
    wr, wi = jnp.asarray(wr_np), jnp.asarray(wi_np)

    tols = {"complex": dict(rtol=1e-5, atol=1e-5),
            "amp": dict(rtol=1e-4, atol=1e-5)}
    for mode in ("complex", "amp"):
        fwd = jax.jit(functools.partial(idft1d_forward,
                                        pos1=pos1, pos2=pos2, mode=mode))
        out = jax.block_until_ready(fwd(x, w_stack))
        ref = idft1d_reference(x, wr, wi, pos1, pos2, mode=mode)
        assert out.shape == (B, 2 * len(pos1), H, f_out), out.shape
        np.testing.assert_allclose(np.asarray(out), np.asarray(ref), **tols[mode])

    print("KERNEL_OK")
</pallas_src>

<mosaic_0001>
module attributes {stable_mosaic.version = 11 : i64} {
  func.func @_idft1d_kernel(%arg0: i32, %arg1: i32, %arg2: i32, %arg3: memref<2xi32, #tpu.memory_space<smem>>, %arg4: memref<2xi32, #tpu.memory_space<smem>>, %arg5: memref<2x1x16x16xf32, #tpu.memory_space<vmem>>, %arg6: memref<2x1x16x16xf32, #tpu.memory_space<vmem>>, %arg7: memref<2x2x16x16xf32, #tpu.memory_space<vmem>>, %arg8: memref<2x2x1x16x16xf32, #tpu.memory_space<vmem>>) attributes {dimension_semantics = [#tpu.dimension_semantics<parallel>, #tpu.dimension_semantics<parallel>, #tpu.dimension_semantics<parallel>], iteration_bounds = array<i64: 1, 2, 1>, scalar_prefetch = 2 : i64, scratch_operands = 0 : i64, tpu.core_type = #tpu.core_type<tc>, window_params = [{transform_indices = @transform_0, window_bounds = array<i64: 2, 1, 16, 16>}, {transform_indices = @transform_1, window_bounds = array<i64: 2, 1, 16, 16>}, {transform_indices = @transform_2, window_bounds = array<i64: 2, 2, 16, 16>}, {transform_indices = @transform_3, window_bounds = array<i64: 2, 2, 1, 16, 16>}]} {
    %c0 = arith.constant 0 : index
    %c0_0 = arith.constant 0 : index
    %c0_1 = arith.constant 0 : index
    %c0_2 = arith.constant 0 : index
    %0 = vector.load %arg5[%c0, %c0_0, %c0_1, %c0_2] : memref<2x1x16x16xf32, #tpu.memory_space<vmem>>, vector<2x1x16x16xf32>
    %1 = vector.shape_cast %0 : vector<2x1x16x16xf32> to vector<2x16x16xf32>
    %2 = vector.shape_cast %1 : vector<2x16x16xf32> to vector<32x16xf32>
    %c0_3 = arith.constant 0 : index
    %c0_4 = arith.constant 0 : index
    %c0_5 = arith.constant 0 : index
    %c0_6 = arith.constant 0 : index
    %3 = vector.load %arg6[%c0_3, %c0_4, %c0_5, %c0_6] : memref<2x1x16x16xf32, #tpu.memory_space<vmem>>, vector<2x1x16x16xf32>
    %4 = vector.shape_cast %3 : vector<2x1x16x16xf32> to vector<2x16x16xf32>
    %5 = vector.shape_cast %4 : vector<2x16x16xf32> to vector<32x16xf32>
    %c0_7 = arith.constant 0 : index
    %c0_8 = arith.constant 0 : index
    %c0_9 = arith.constant 0 : index
    %c0_10 = arith.constant 0 : index
    %6 = vector.load %arg7[%c0_7, %c0_8, %c0_9, %c0_10] : memref<2x2x16x16xf32, #tpu.memory_space<vmem>>, vector<1x1x16x16xf32>
    %7 = vector.shape_cast %6 : vector<1x1x16x16xf32> to vector<16x16xf32>
    %cst = arith.constant dense<0.000000e+00> : vector<32x16xf32>
    %8 = tpu.matmul %2, %7, %cst {dimension_numbers = #tpu.dot_dimension_numbers<[1], [0], [0], [1], [0, 0, 1, 1], [], []>} : vector<32x16xf32>, vector<16x16xf32>, vector<32x16xf32> -> vector<32x16xf32>
    %c0_11 = arith.constant 0 : index
    %c1 = arith.constant 1 : index
    %c0_12 = arith.constant 0 : index
    %c0_13 = arith.constant 0 : index
    %9 = vector.load %arg7[%c0_11, %c1, %c0_12, %c0_13] : memref<2x2x16x16xf32, #tpu.memory_space<vmem>>, vector<1x1x16x16xf32>
    %10 = vector.shape_cast %9 : vector<1x1x16x16xf32> to vector<16x16xf32>
    %cst_14 = arith.constant dense<0.000000e+00> : vector<32x16xf32>
    %11 = tpu.matmul %5, %10, %cst_14 {dimension_numbers = #tpu.dot_dimension_numbers<[1], [0], [0], [1], [0, 0, 1, 1], [], []>} : vector<32x16xf32>, vector<16x16xf32>, vector<32x16xf32> -> vector<32x16xf32>
    %12 = arith.addf %8, %11 : vector<32x16xf32>
    %13 = vector.shape_cast %12 : vector<32x16xf32> to vector<2x16x16xf32>
    %c0_15 = arith.constant 0 : index
    %c0_16 = arith.constant 0 : index
    %c0_17 = arith.constant 0 : index
    %c0_18 = arith.constant 0 : index
    %c0_19 = arith.constant 0 : index
    %14 = vector.load %arg8[%c0_15, %c0_16, %c0_17, %c0_18, %c0_19] : memref<2x2x1x16x16xf32, #tpu.memory_space<vmem>>, vector<2x1x1x16x16xf32>
    %15 = vector.shape_cast %14 : vector<2x1x1x16x16xf32> to vector<2x16x16xf32>
    %16 = vector.shape_cast %13 : vector<2x16x16xf32> to vector<2x1x1x16x16xf32>
    tpu.vector_store %arg8[%c0_15, %c0_16, %c0_17, %c0_18, %c0_19], %16 {strides = array<i32>} : memref<2x2x1x16x16xf32, #tpu.memory_space<vmem>>, vector<2x1x1x16x16xf32>,
    %c1_20 = arith.constant 1 : index
    %c0_21 = arith.constant 0 : index
    %c0_22 = arith.constant 0 : index
    %c0_23 = arith.constant 0 : index
    %17 = vector.load %arg7[%c1_20, %c0_21, %c0_22, %c0_23] : memref<2x2x16x16xf32, #tpu.memory_space<vmem>>, vector<1x1x16x16xf32>
    %18 = vector.shape_cast %17 : vector<1x1x16x16xf32> to vector<16x16xf32>
    %cst_24 = arith.constant dense<0.000000e+00> : vector<32x16xf32>
    %19 = tpu.matmul %2, %18, %cst_24 {dimension_numbers = #tpu.dot_dimension_numbers<[1], [0], [0], [1], [0, 0, 1, 1], [], []>} : vector<32x16xf32>, vector<16x16xf32>, vector<32x16xf32> -> vector<32x16xf32>
    %c1_25 = arith.constant 1 : index
    %c1_26 = arith.constant 1 : index
    %c0_27 = arith.constant 0 : index
    %c0_28 = arith.constant 0 : index
    %20 = vector.load %arg7[%c1_25, %c1_26, %c0_27, %c0_28] : memref<2x2x16x16xf32, #tpu.memory_space<vmem>>, vector<1x1x16x16xf32>
    %21 = vector.shape_cast %20 : vector<1x1x16x16xf32> to vector<16x16xf32>
    %cst_29 = arith.constant dense<0.000000e+00> : vector<32x16xf32>
    %22 = tpu.matmul %5, %21, %cst_29 {dimension_numbers = #tpu.dot_dimension_numbers<[1], [0], [0], [1], [0, 0, 1, 1], [], []>} : vector<32x16xf32>, vector<16x16xf32>, vector<32x16xf32> -> vector<32x16xf32>
    %23 = arith.addf %19, %22 : vector<32x16xf32>
    %24 = vector.shape_cast %23 : vector<32x16xf32> to vector<2x16x16xf32>
    %c0_30 = arith.constant 0 : index
    %c1_31 = arith.constant 1 : index
    %c0_32 = arith.constant 0 : index
    %c0_33 = arith.constant 0 : index
    %c0_34 = arith.constant 0 : index
    %25 = vector.load %arg8[%c0_30, %c1_31, %c0_32, %c0_33, %c0_34] : memref<2x2x1x16x16xf32, #tpu.memory_space<vmem>>, vector<2x1x1x16x16xf32>
    %26 = vector.shape_cast %25 : vector<2x1x1x16x16xf32> to vector<2x16x16xf32>
    %27 = vector.shape_cast %24 : vector<2x16x16xf32> to vector<2x1x1x16x16xf32>
    tpu.vector_store %arg8[%c0_30, %c1_31, %c0_32, %c0_33, %c0_34], %27 {strides = array<i32>} : memref<2x2x1x16x16xf32, #tpu.memory_space<vmem>>, vector<2x1x1x16x16xf32>,
    return
  }
  func.func @transform_0(%arg0: i32, %arg1: i32, %arg2: i32, %arg3: memref<2xi32, #tpu.memory_space<smem>>, %arg4: memref<2xi32, #tpu.memory_space<smem>>) -> (i32, i32, i32, i32) {
    %0 = arith.index_cast %arg1 : i32 to index
    %1 = memref.load %arg3[%0] : memref<2xi32, #tpu.memory_space<smem>>
    %c0_i32 = arith.constant 0 : i32
    %c0_i32_0 = arith.constant 0 : i32
    %c0_i32_1 = arith.constant 0 : i32
    return %arg0, %1, %c0_i32, %c0_i32_0 : i32, i32, i32, i32
  }
  func.func @transform_1(%arg0: i32, %arg1: i32, %arg2: i32, %arg3: memref<2xi32, #tpu.memory_space<smem>>, %arg4: memref<2xi32, #tpu.memory_space<smem>>) -> (i32, i32, i32, i32) {
    %0 = arith.index_cast %arg1 : i32 to index
    %1 = memref.load %arg4[%0] : memref<2xi32, #tpu.memory_space<smem>>
    %c0_i32 = arith.constant 0 : i32
    %c0_i32_0 = arith.constant 0 : i32
    %c0_i32_1 = arith.constant 0 : i32
    return %arg0, %1, %c0_i32, %c0_i32_0 : i32, i32, i32, i32
  }
  func.func @transform_2(%arg0: i32, %arg1: i32, %arg2: i32, %arg3: memref<2xi32, #tpu.memory_space<smem>>, %arg4: memref<2xi32, #tpu.memory_space<smem>>) -> (i32, i32, i32, i32) {
    %c0_i32 = arith.constant 0 : i32
    %c0_i32_0 = arith.constant 0 : i32
    %c0_i32_1 = arith.constant 0 : i32
    %c0_i32_2 = arith.constant 0 : i32
    return %c0_i32, %c0_i32_0, %c0_i32_1, %arg2 : i32, i32, i32, i32
  }
  func.func @transform_3(%arg0: i32, %arg1: i32, %arg2: i32, %arg3: memref<2xi32, #tpu.memory_space<smem>>, %arg4: memref<2xi32, #tpu.memory_space<smem>>) -> (i32, i32, i32, i32, i32) {
    %c0_i32 = arith.constant 0 : i32
    %c0_i32_0 = arith.constant 0 : i32
    %c0_i32_1 = arith.constant 0 : i32
    return %arg0, %c0_i32, %arg1, %c0_i32_0, %arg2 : i32, i32, i32, i32, i32
  }
}

</mosaic_0001>

<bundles_post_ra>
// kernel: idft1d_forward.1
= control target key start
LH: loop header
LB: loop body
LE: loop exit
PB: predicated region body
PF: predicated region fallthrough
CT: control target
= control target key end

     0   :  { %s1745_s0 = inlined_call_operand.vmem [shape: s32[2], index: 0, kind: input, shape index: {}]   ;;  %s1746_s2 = inlined_call_operand.hbm [shape: f32[2,4,16,16], index: 2, kind: input, shape index: {}, may-alias: {2,3}]   ;;  %s1747_s3 = inlined_call_operand.hbm [shape: f32[2,4,16,16], index: 3, kind: input, shape index: {}, may-alias: {2,3}]   ;;  %s1748_s4 = inlined_call_operand.hbm [shape: f32[2,2,16,16], index: 4, kind: input, shape index: {}]   ;;  %s1749_s5 = inlined_call_operand.hbm [shape: f32[2,2,2,16,16], index: 5, kind: output, shape index: {}]   ;;  %s1750_s1 = inlined_call_operand.vmem [shape: s32[2], index: 1, kind: input, shape index: {}]  }
   0x1   :  { %1761 = sst [smem:[#allocation35_spill]] %s1748_s4  ;;  %s10_s20 = sshll.u32 %s1745_s0, 4  ;;  %s11_s20 = int_to_ptr.vmem [resolvable:$true] %s10_s20 }
   0x2   :  { %1762 = sst [smem:[#allocation36_spill]] %s1749_s5  ;;  %s14_s23 = sshll.u32 %s1750_s1, 4  ;;  %s15_s23 = int_to_ptr.vmem [resolvable:$true] %s14_s23 }
   0x3   :  { %s1195_s24 = scalar_lea.vmem %s11_s20, 16  ;;  %p1200_p1 = scmp.lt.s32.totalorder %s11_s20, %s11_s20 }
   0x4   :  { %p1196_p0 = scmp.ne.s32.totalorder %s11_s20, %s1195_s24  ;;  %p1201_p2 = scmp.lt.s32.totalorder %s1195_s24, %s1195_s24 }
   0x6   :  { %p1202_p3 = por %p1201_p2, %p1200_p1 }
   0x8   :  { %p1203_p4 = pnand %p1202_p3, %p1196_p0 }
   0xa   :  { %1206 = shalt.err (!%p1203_p4)  }
   0xb   :  { %s1359_s25 = smov [#allocation3]   ;;  %s1207_s26 = scalar_lea.vmem %s15_s23, 16 }
   0xc   :  { %13 = dma.vmem_to_smem %s11_s20, 16, %s1359_s25, [#allocation2] }
   0xd   :  { %p1208_p5 = scmp.ne.s32.totalorder %s15_s23, %s1207_s26  ;;  %p1212_p6 = scmp.lt.s32.totalorder %s15_s23, %s15_s23 }
   0xe   :  { %p1213_p7 = scmp.lt.s32.totalorder %s1207_s26, %s1207_s26 }
  0x10   :  { %p1214_p8 = por %p1213_p7, %p1212_p6 }
  0x12   :  { %p1215_p9 = pnand %p1214_p8, %p1208_p5 }
  0x14   :  { %1218 = shalt.err (!%p1215_p9)  }
  0x15   :  { %s1360_s0 = smov [#allocation4]  }
  0x16   :  { %17 = dma.vmem_to_smem %s15_s23, 16, %s1360_s0, [#allocation2] }
  0x17   :  { %1293 = dma.done.wait [#allocation2], 32 }
  0x18   :  { %1294 = vsyncadd [#allocation2], 4294967264 }
  0x19   :  { %19 = sfence }
  0x1a   :  { %20 = vsyncpa [#allocation6], 0 }
  0x1b   :  { %22 = vsyncpa [#allocation6 + $0x1], 0 }
  0x1c   :  { %23 = vsyncpa [#allocation9], 0 }
  0x1d   :  { %25 = vsyncpa [#allocation9 + $0x1], 0 }
  0x1e   :  { %26 = vsyncpa [#allocation7], 0 }
  0x1f   :  { %28 = vsyncpa [#allocation7 + $0x1], 0  ;;  %s1419_s1 = smov 0   ;;  %s1421_s27 = smov 0  }
  0x20   :  { %s1423_s28 = smov 0   ;;  %s1425_s29 = smov 0  }
  0x21   :  { %s1427_s30 = smov 0   ;;  %s1429_s6 = smov 0  }
  0x22   :  { %s1431_s7 = smov 0   ;;  %s1433_s8 = smov 0  }
  0x23   :  { %s1435_s9 = smov 0   ;;  %s1437_s10 = smov 0  }
  0x24   :  { %s1439_s11 = smov 0   ;;  %s1441_s12 = smov 0  }
  0x25 LB: > { %1763 = sst [smem:[#allocation27_spill]] %s1321_s28  ;;  %s1478_s13 = sadd.s32 4294967295, %s1357_s12   ;;  %s1357_s12 = sphi %s1441_s12, %s34_s12   ;;  %s1353_s11 = sphi %s1439_s11, %s1805_s11   ;;  %s1349_s10 = sphi %s1437_s10, %s1804_s10   ;;  %s1345_s9 = sphi %s1435_s9, %s1795_s9   ;;  %s1341_s8 = sphi %s1433_s8, %s1803_s8   ;;  %s1337_s7 = sphi %s1431_s7, %s1802_s7   ;;  %s1333_s6 = sphi %s1429_s6, %s1801_s6   ;;  %s1329_s30 = sphi %s1427_s30, %s1800_s30   ;;  %s1325_s29 = sphi %s1425_s29, %s1799_s29   ;;  %s1321_s28 = sphi %s1423_s28, %s1792_s28   ;;  %s1317_s27 = sphi %s1421_s27, %s1798_s27   ;;  %s1313_s1 = sphi %s1419_s1, %s1797_s1  }
  0x26   : > { %1764 = sst [smem:[#allocation28_spill]] %s1345_s9  ;;  %s49_s15 = sadd.s32 1, %s1353_s11 }
  0x27   : > { %1765 = sst [smem:[#allocation29_spill]] %s1349_s10  ;;  %p51_p10 = scmp.ge.s32.totalorder %s49_s15, 2 }
  0x28   : > { %s57_s16 = sld [smem:[#allocation3 + %s1353_s11]]  ;;  %s64_s17 = sadd.s32 1, %s1345_s9 }
  0x29   : > { %p71_p11 = scmp.ne.s32.totalorder %s1345_s9, %s1341_s8  ;;  %p72_p12 = scmp.eq.s32.totalorder %s1357_s12, 0 }
  0x2a   : > { %s1807_s15 = smov (%p51_p10, %s49_s15), 0  ;;  %p77_p0 = scmp.ne.s32.totalorder %s1341_s8, %s1337_s7 }
  0x2b   : > { %1766 = sst [smem:[#allocation30_spill]] %s1807_s15  ;;  %p1491_p13 = por %p72_p12, %p71_p11 }
  0x2c   : > { %s58_s19 = sld [smem:[#allocation3 + %s1807_s15]]  ;;  %p1754_p1 = scmp.eq.s32.totalorder %s1478_s13, 0 }
  0x2d   : > { %s87_s20 = sld [smem:[#allocation4 + %s1353_s11]]  ;;  %s94_s21 = sadd.s32 1, %s1333_s6 }
  0x2e   : > { %p1502_p2 = por %p1754_p1, %p77_p0  ;;  %s88_s23 = sld [smem:[#allocation4 + %s1807_s15]] }
  0x2f   : > { %p101_p3 = scmp.ne.s32.totalorder %s1333_s6, %s1329_s30  ;;  %p107_p4 = scmp.ne.s32.totalorder %s1329_s30, %s1325_s29 }
  0x30   : > { %s1768_s22 = scalar_select %p1502_p2, 1, 0 }
  0x31   : > { %s144_s24 = ssub.s32 %s1353_s11, %s1807_s15  ;;  %s150_s25 = sadd.s32 1, %s1321_s28 }
  0x32   : > { %p1516_p5 = por %p101_p3, %p72_p12  ;;  %p1522_p6 = por %p107_p4, %p1754_p1 }
  0x33   : > { %s60_s7 = ssub.s32 %s57_s16, %s58_s19  ;;  %p148_p7 = scmp.eq.s32.totalorder %s144_s24, 0 }
  0x34   : > { %s1769_s26 = scalar_select %p1516_p5, 1, 0 }
  0x35   : > { %s1770_s0 = scalar_select %p1522_p6, 1, 0 }
  0x36   : > { %p62_p8 = scmp.eq.s32.totalorder %s60_s7, 0  ;;  %p160_p9 = scmp.ne.s32.totalorder %s1321_s28, %s1317_s27 }
  0x37   : > { %1771 = sst [smem:[#allocation31_spill]] %s1770_s0  ;;  %s90_s29 = ssub.s32 %s87_s20, %s88_s23 }
  0x38   : > { %p161_p10 = scmp.eq.s32.totalorder %s1478_s13, 1  ;;  %p92_p11 = scmp.eq.s32.totalorder %s90_s29, 0 }
  0x39   : > { %s1530_s14 = scalar_select %p62_p8, %s1345_s9, %s64_s17  }
  0x3a   : > { %p1532_p12 = por %p161_p10, %p160_p9  ;;  %p166_p0 = scmp.ne.s32.totalorder %s1317_s27, %s1313_s1 }
  0x3b   : > { %1772 = sst [smem:[#allocation32_spill]] %s1530_s14  ;;  %s1776_s0 = sadd.s32 4294967294, %s1357_s12  }
  0x3c   : > { %s1773_s15 = scalar_select %p1532_p12, 1, 0 }
  0x3d   : > { %s1537_s5 = scalar_select %p148_p7, %s1321_s28, %s150_s25  }
  0x3e   : > { %s1540_s10 = scalar_select %p92_p11, %s1333_s6, %s94_s21  }
  0x3f   : > { %1774 = sst [smem:[#allocation33_spill]] %s1537_s5  ;;  %p167_p3 = scmp.eq.s32.totalorder %s1776_s0, 1 }
  0x40   : > { %1775 = sst [smem:[#allocation34_spill]] %s1540_s10  ;;  %p920_p4 = scmp.ge.s32.totalorder %s1357_s12, 1 }
  0x41   : > { %p174_p1 = scmp.lt.s32.totalorder %s1357_s12, 3  ;;  %p1548_p6 = por %p167_p3, %p166_p0 }
  0x42   : > { %s1361_s19 = smov [#allocation10]   ;;  %p1779_p9 = scmp.eq.s32.totalorder %s1478_s13, 0 }
  0x43   : > { %s1777_s16 = scalar_select %p1548_p6, 1, 0 }
  0x44   : > { %p1552_p8 = pnand %p920_p4, %p174_p1  ;;  %s188_s20 = sshll.u32 %s1361_s19, 4  ;;  %s189_s20 = int_to_ptr.vmem [resolvable:$true] %s188_s20 }
  0x45   : > { %s1230_s21 = scalar_lea.vmem %s189_s20, 1024  ;;  %p1238_p3 = scmp.lt.s32.totalorder %s189_s20, %s189_s20 }
  0x46   : > { %p1064_p7 = pneg %p1552_p8  ;;  %p1231_p12 = scmp.ne.s32.totalorder %s189_s20, %s1230_s21 }
  0x47   : > { %p1239_p5 = scmp.lt.s32.totalorder %s1230_s21, %s1230_s21 }
  0x48   : > { %p1065_p10 = pnand %p1064_p7, %p1779_p9 }
  0x49   : > { %p1240_p6 = por %p1239_p5, %p1238_p3 }
  0x4a   : > { %p1221_p11 = pneg %p1065_p10 }
  0x4c   : > { %p1233_p2 = pnand %p1231_p12, %p1221_p11 }
  0x4e   : > { %p1234_p0 = pneg %p1233_p2 }
  0x50   : > { %p1241_p1 = pnand %p1240_p6, %p1234_p0 }
  0x52   : > { %1244 = shalt.err (!%p1241_p1)
}
  0x53   : > { %s1362_s23 = smov 128   ;;  %s1363_s24 = smov 8  }
  0x54   : > { %s1780_s4 = sld [smem:[#allocation35_spill]]  ;;  %p922_p4 = scmp.ge.s32.totalorder %s1357_s12, 2 }
  0x56   : > { %198 = sbr.rel (%p922_p4) target bundleno = 124 (0x7c), region = 20 }
  0x5a   : > { %1067 = dma.hbm_to_vmem [thread:$0]  (!%p1065_p10), %s1780_s4, 1024, %s189_s20, [#allocation9], %s1362_s23, %s1362_s23, %s1363_s24  }
  0x5b   : > { %s202_s7 = sand.u32 1, %s1345_s9   ;;  %s1364_s19 = smov 1024  }
  0x5c   : > { %s923_s29 = sshll.u32 %s202_s7, 5  ;;  %1035 = sst [smem:[#allocation13]] (%p1491_p13), %s1364_s19 }
  0x5d   : > { %s1032_s20 = scalar_select %p1491_p13, [#allocation3], [#allocation18] }
  0x5e   : > { %s1033_s21 = scalar_select %p1491_p13, %s1353_s11, 0 }
  0x5f   : > { %s1034_s23 = scalar_select %p1491_p13, [#allocation0], [#allocation19] }
  0x60   : > { %s207_s24 = sld [smem:[%s1032_s20 + %s1033_s21]]  ;;  %s206_s25 = scalar_lea.vmem [#allocation5], %s923_s29 }
  0x61   : > { %s229_s0 = sshll.u32 %s206_s25, 4  ;;  %s221_s4 = sld [smem:[%s1034_s23]]   ;;  %s230_s0 = int_to_ptr.vmem [resolvable:$true] %s229_s0 }
  0x62   : > { %s1365_s14 = smov 256   ;;  %s1366_s9 = smov 2  }
  0x63   : > { %1036 = sst [smem:[#allocation13 + $0x1]] (%p1491_p13), %s1365_s14  ;;  %s1367_s19 = smov 128  }
  0x64   : > { %1037 = sst [smem:[#allocation13 + $0x2]] (%p1491_p13), %s1366_s9  ;;  %s1368_s25 = smov 8  }
  0x65   : > { %1038 = sst [smem:[#allocation13 + $0x3]] (%p1491_p13), %s1367_s19  ;;  %s203_s28 = scalar_lea.sflag [#allocation6], %s202_s7 }
  0x66   : > { %s963_s10 = sshll.u32 %s207_s24, 8  ;;  %1039 = sst [smem:[#allocation13 + $0x4]] (%p1491_p13), %s1367_s19 }
  0x67   : > { %s216_s29 = scalar_lea.hbm %s1746_s2, %s963_s10  ;;  %s926_s21 = sshll.u32 %s221_s4, 26 }
  0x68   : > { %s927_s23 = sadd.s32 134217728, %s926_s21  ;;  %1040 = sst [smem:[#allocation13 + $0x5]] (%p1491_p13), %s1368_s25 }
  0x69   : > { %s1369_s14 = smov 131072  }
  0x6a   : > { %1041 = dma.general (%p1491_p13), %s216_s29, 512, %s230_s0, %s203_s28, %s1369_s14, [#allocation13], %s927_s23, 0  }
  0x6b   : > { %s252_s9 = sand.u32 1, %s1357_s12   ;;  %s254_s5 = sand.u32 1, %s1333_s6  }
  0x6c   : > { %s928_s4 = sshll.u32 %s254_s5, 5  ;;  %p1781_p2 = scmp.ne.s32.totalorder %s1769_s26, 0 }
  0x6d   : > { %s256_s24 = scalar_lea.vmem [#allocation8], %s928_s4  ;;  %s1370_s20 = smov 1024  }
  0x6e   : > { %s1042_s10 = scalar_select %p1781_p2, [#allocation4], [#allocation20] }
  0x6f   : > { %s1043_s7 = scalar_select %p1781_p2, %s1353_s11, 0 }
  0x70   : > { %s1044_s28 = scalar_select %p1781_p2, [#allocation0], [#allocation21] }
  0x71   : > { %s257_s18 = sld [smem:[%s1042_s10 + %s1043_s7]]  ;;  %s279_s0 = sshll.u32 %s256_s24, 4  ;;  %s280_s0 = int_to_ptr.vmem [resolvable:$true] %s279_s0 }
  0x72   : > { %s271_s19 = sld [smem:[%s1044_s28]]   ;;  %s1371_s29 = smov 256  }
  0x73   : > { %1045 = sst [smem:[#allocation15]] (%p1781_p2), %s1370_s20  ;;  %s1372_s21 = smov 2  }
  0x74   : > { %1046 = sst [smem:[#allocation15 + $0x1]] (%p1781_p2), %s1371_s29  ;;  %s1373_s23 = smov 128  }
  0x75   : > { %1047 = sst [smem:[#allocation15 + $0x2]] (%p1781_p2), %s1372_s21  ;;  %s1374_s28 = smov 8  }
  0x76   : > { %1048 = sst [smem:[#allocation15 + $0x3]] (%p1781_p2), %s1373_s23  ;;  %s253_s24 = scalar_lea.sflag [#allocation9], %s252_s9 }
  0x77   : > { %s964_s25 = sshll.u32 %s257_s18, 8  ;;  %1049 = sst [smem:[#allocation15 + $0x4]] (%p1781_p2), %s1373_s23 }
  0x78   : > { %s266_s4 = scalar_lea.hbm %s1747_s3, %s964_s25  ;;  %s931_s10 = sshll.u32 %s271_s19, 26 }
  0x79   : > { %s932_s7 = sadd.s32 134217728, %s931_s10  ;;  %1050 = sst [smem:[#allocation15 + $0x5]] (%p1781_p2), %s1374_s28 }
  0x7a   : > { %s1375_s20 = smov 131072  }
  0x7b   : > { %1051 = dma.general (%p1781_p2), %s266_s4, 512, %s280_s0, %s253_s24, %s1375_s20, [#allocation15], %s932_s7, 0  }
  0x7c PF: > { %304 = sbr.rel (%p1552_p8) target bundleno = 369 (0x171), region = 32  ;;  %s306_s18 = sand.u32 (!%p1552_p8), 1, %s1341_s8  }
  0x7d   : > { %s934_s29 = sshll.u32 (!%p1552_p8), %s306_s18, 5  ;;  %s307_s21 = scalar_lea.sflag (!%p1552_p8), [#allocation6], %s306_s18 }
  0x7e   : > { %s1620_s23 = scalar_lea.vmem (!%p1552_p8), [#allocation5], %s934_s29  ;;  %p1782_p13 = scmp.ne.s32.totalorder (!%p1552_p8), %s1768_s22, 0 }
  0x81   : > { %1296 = dma.done.wait (%p1782_p13), %s307_s21, 512  }
  0x82   : > { %1298 = vsyncadd (%p1782_p13), %s307_s21, 4294966784  ;;  %s1783_s26 = sld [smem:[#allocation31_spill]]  ;;  %s315_s9 = sand.u32 1, %s1478_s13  }
  0x83   : > { %s317_s0 = sand.u32 1, %s1329_s30   ;;  %s316_s17 = scalar_lea.sflag [#allocation9], %s315_s9 }
  0x84   : > { %s935_s19 = sshll.u32 %s317_s0, 5 }
  0x85   : > { %s1628_s25 = scalar_lea.vmem [#allocation8], %s935_s19 }
  0x88   : > { %p1784_p5 = scmp.ne.s32.totalorder %s1783_s26, 0 }
  0x8a   : > { %1300 = dma.done.wait (%p1784_p5), %s316_s17, 512  }
  0x8b   : > { %1302 = vsyncadd (%p1784_p5), %s316_s17, 4294966784  ;;  %p1785_p6 = scmp.eq.s32.totalorder %s1478_s13, 0 }
  0x8d   : > { %1304 = dma.done.wait (%p1785_p6), [#allocation9], 1024   ;;  %p1786_p12 = pmov %p1785_p6 }
  0x8e   : > { %v368_v0 = vld [vmem:[#allocation10 + $0x18] sm:$0xff]  ;;  %v365_v1 = vld [vmem:[#allocation10 + $0x8] sm:$0xff]  ;;  %v367_v2 = vld [vmem:[#allocation10 + $0x10] sm:$0xff]  ;;  %vm369_vm0 = vcmask 130048   ;;  %s348_s13 = sand.u32 1, %s1317_s27  }
  0x8f   : > { %1306 = vsyncadd (%p1786_p12), [#allocation9], 4294966272  ;;  %990 = vmatprep.subr.mxu0 %v368_v0  ;;  %1000 = vmatprep.subr.mxu1 %v365_v1  ;;  %v364_v3 = vld [vmem:[#allocation10] sm:$0xff]  ;;  %v361_v6 = vld [vmem:[%s1628_s25 + $0x8] sm:$0xff]  ;;  %s937_s22 = sshll.u32 %s348_s13, 6  ;;  %s750_s5 = scalar_lea.sflag [#allocation7], %s348_s13 }
  0x90   : > { %v360_v4 = vld [vmem:[%s1628_s25] sm:$0xff]  ;;  %991 = vmatpush3.msra.mxu0 %v368_v0  ;;  %1001 = vmatpush3.msra.mxu1 %v365_v1  ;;  %v357_v7 = vld [vmem:[%s1620_s23 + $0x8] sm:$0xff]  ;;  %v573_v8 = vld [vmem:[#allocation10 + $0x38] sm:$0xff]  ;;  %s1665_s14 = scalar_lea.vmem [#allocation11], %s937_s22 }
  0x91   : > { %v356_v5 = vld [vmem:[%s1620_s23] sm:$0xff]  ;;  %992 = vmatprep.subr.mxu0 %v367_v2  ;;  %1002 = vmatprep.subr.mxu1 %v364_v3  ;;  %v570_v9 = vld [vmem:[#allocation10 + $0x28] sm:$0xff]  ;;  %v362_v10 = vld [vmem:[%s1628_s25 + $0x10] sm:$0xff] }
  0x92   : > { %993 = vmatpush3.msra.mxu0 %v367_v2  ;;  %994 = vmatprep.mubr.msk.f32.mxu0 %vm369_vm0, %v360_v4  ;;  %v358_v11 = vld [vmem:[%s1620_s23 + $0x10] sm:$0xff]  ;;  %v363_v12 = vld [vmem:[%s1628_s25 + $0x18] sm:$0xff]  ;;  %v569_v15 = vld [vmem:[#allocation10 + $0x20] sm:$0xff] }
  0x93   : > { %1003 = vmatpush3.msra.mxu1 %v364_v3  ;;  %1004 = vmatprep.mubr.msk.f32.mxu1 %vm369_vm0, %v356_v5  ;;  %v359_v13 = vld [vmem:[%s1620_s23 + $0x18] sm:$0xff]  ;;  %v572_v14 = vld [vmem:[#allocation10 + $0x30] sm:$0xff] }
  0x94   : > { %995 = vmatmul.mubr.msk.f32.vlgmr.msra.gmra.mxu0 %vm369_vm0, %v361_v6  ;;  %1005 = vmatmul.mubr.msk.f32.vlgmr.msra.gmra.mxu1 %vm369_vm0, %v357_v7 }
  0x95   : > { %1010 = vmatprep.subr.mxu0 %v573_v8  ;;  %1020 = vmatprep.subr.mxu1 %v570_v9 }
  0x96   : > { %1011 = vmatpush3.msra.mxu0 %v573_v8  ;;  %1021 = vmatpush3.msra.mxu1 %v570_v9 }
  0x97   : > { %997 = vmatprep.mubr.msk.f32.mxu0 %vm369_vm0, %v362_v10  ;;  %1007 = vmatprep.mubr.msk.f32.mxu1 %vm369_vm0, %v358_v11 }
  0x98   : > { %998 = vmatmul.mubr.msk.f32.gmra.mxu0 %vm369_vm0, %v363_v12  ;;  %1008 = vmatmul.mubr.msk.f32.gmra.mxu1 %vm369_vm0, %v359_v13 }
  0x99   : > { %1012 = vmatprep.subr.mxu0 %v572_v14  ;;  %1022 = vmatprep.subr.mxu1 %v569_v15 }
  0x9a   : > { %1013 = vmatpush3.msra.mxu0 %v572_v14  ;;  %1023 = vmatpush3.msra.mxu1 %v569_v15 }
  0x9b   : > { %1014 = vmatprep.mubr.msk.f32.mxu0 %vm369_vm0, %v360_v4  ;;  %1024 = vmatprep.mubr.msk.f32.mxu1 %vm369_vm0, %v356_v5 }
  0x9c   : > { %1015 = vmatmul.mubr.msk.f32.vlgmr.msra.gmra.mxu0 %vm369_vm0, %v361_v6  ;;  %1025 = vmatmul.mubr.msk.f32.vlgmr.msra.gmra.mxu1 %vm369_vm0, %v357_v7 }
  0x9d   : > { %1017 = vmatprep.mubr.msk.f32.mxu0 %vm369_vm0, %v362_v10  ;;  %1027 = vmatprep.mubr.msk.f32.mxu1 %vm369_vm0, %v358_v11 }
  0xa0   : > { %1018 = vmatmul.mubr.msk.f32.gmra.mxu0 %vm369_vm0, %v363_v12  ;;  %1028 = vmatmul.mubr.msk.f32.gmra.mxu1 %vm369_vm0, %v359_v13 }
 0x154   : > { %v996_v16 = vpop.f32.mrf.mxu0  ;;  %v1006_v17 = vpop.f32.mrf.mxu1 }
 0x155   : > { %v551_v18 = vadd.f32 %v1006_v17, %v996_v16 }
 0x156   : > { %v448_v19 = vpop.f32.mrf.mxu0  ;;  %v545_v20 = vpop.f32.mrf.mxu1 }
 0x157   : > { %565 = vst.msk [vmem:[%s1665_s14 + $0x8] sm:$0xff] %vm369_vm0, %v551_v18  ;;  %v546_v21 = vadd.f32 %v545_v20, %v448_v19 }
 0x158   : > { %v999_v22 = vpop.f32.mrf.mxu0  ;;  %v1009_v23 = vpop.f32.mrf.mxu1 }
 0x159   : > { %564 = vst.msk [vmem:[%s1665_s14] sm:$0xff] %vm369_vm0, %v546_v21  ;;  %v561_v24 = vadd.f32 %v1009_v23, %v999_v22 }
 0x15a   : > { %v458_v25 = vpop.f32.mrf.mxu0  ;;  %v555_v26 = vpop.f32.mrf.mxu1 }
 0x15b   : > { %567 = vst.msk [vmem:[%s1665_s14 + $0x28] sm:$0xff] %vm369_vm0, %v561_v24  ;;  %v556_v27 = vadd.f32 %v555_v26, %v458_v25 }
 0x15c   : > { %v1016_v28 = vpop.f32.mrf.mxu0  ;;  %v1026_v29 = vpop.f32.mrf.mxu1 }
 0x15d   : > { %566 = vst.msk [vmem:[%s1665_s14 + $0x20] sm:$0xff] %vm369_vm0, %v556_v27  ;;  %v731_v30 = vadd.f32 %v1026_v29, %v1016_v28 }
 0x15e   : > { %v640_v31 = vpop.f32.mrf.mxu0  ;;  %v725_v32 = vpop.f32.mrf.mxu1 }
 0x15f   : > { %955 = vst.msk [vmem:[%s1665_s14 + $0x18] sm:$0xff] %vm369_vm0, %v731_v30  ;;  %v726_v33 = vadd.f32 %v725_v32, %v640_v31 }
 0x160   : > { %v1019_v34 = vpop.f32.mrf.mxu0  ;;  %v1029_v35 = vpop.f32.mrf.mxu1 }
 0x161   : > { %954 = vst.msk [vmem:[%s1665_s14 + $0x10] sm:$0xff] %vm369_vm0, %v726_v33  ;;  %v741_v36 = vadd.f32 %v1029_v35, %v1019_v34 }
 0x162   : > { %v650_v37 = vpop.f32.mrf.mxu0  ;;  %v735_v38 = vpop.f32.mrf.mxu1 }
 0x163   : > { %957 = vst.msk [vmem:[%s1665_s14 + $0x38] sm:$0xff] %vm369_vm0, %v741_v36  ;;  %v736_v39 = vadd.f32 %v735_v38, %v650_v37 }
 0x165   : > { %956 = vst.msk [vmem:[%s1665_s14 + $0x30] sm:$0xff] %vm369_vm0, %v736_v39 }
 0x166   : > { %s1787_s4 = sld [smem:[#allocation29_spill]]  ;;  %s777_s7 = sshll.u32 %s1665_s14, 4  ;;  %s778_s7 = int_to_ptr.vmem [resolvable:$true] %s777_s7 }
 0x167   : > { %s1788_s20 = sld [smem:[#allocation36_spill]]  ;;  %s1376_s29 = smov 256  }
 0x168   : > { %p1789_p8 = scmp.ne.s32.totalorder %s1773_s15, 0  ;;  %s1377_s21 = smov 512  }
 0x169   : > { %s1378_s23 = smov 2   ;;  %s1379_s26 = smov 128  }
 0x16a   : > { %1056 = sst [smem:[#allocation17]] (%p1789_p8), %s1376_s29  ;;  %s1380_s9 = smov 8  }
 0x16b   : > { %1057 = sst [smem:[#allocation17 + $0x1]] (%p1789_p8), %s1377_s21  ;;  %s1381_s0 = smov 131072  }
 0x16c   : > { %s965_s10 = sshll.u32 %s1787_s4, 8  ;;  %1058 = sst [smem:[#allocation17 + $0x2]] (%p1789_p8), %s1378_s23 }
 0x16d   : > { %s766_s18 = scalar_lea.hbm %s1788_s20, %s965_s10  ;;  %1059 = sst [smem:[#allocation17 + $0x3]] (%p1789_p8), %s1379_s26 }
 0x16e   : > { %1060 = sst [smem:[#allocation17 + $0x4]] (%p1789_p8), %s1379_s26  ;;  %s1382_s19 = smov 0  }
 0x16f   : > { %1061 = sst [smem:[#allocation17 + $0x5]] (%p1789_p8), %s1380_s9 }
 0x170   : > { %1062 = dma.general (%p1789_p8), %s778_s7, 1024, %s766_s18, %s750_s5, %s1381_s0, [#allocation17], %s1382_s19, 0  }
 0x171 PF: > { %s805_s17 = sand.u32 1, %s1313_s1   ;;  %p1790_p7 = scmp.ne.s32.totalorder %s1777_s16, 0 }
 0x172   : > { %s806_s25 = scalar_lea.sflag [#allocation7], %s805_s17 }
 0x173   : > { %p1069_p9 = pnand %p922_p4, %p1790_p7 }
 0x175   : > { %p1070_p10 = pneg %p1069_p9 }
 0x177   : > { %1308 = dma.done.wait (%p1070_p10), %s806_s25, 1024  }
 0x178   : > { %1310 = vsyncadd (%p1070_p10), %s806_s25, 4294966272  ;;  %s34_s12 = sadd.s32 1, %s1357_s12   ;;  %s1791_s13 = sld [smem:[#allocation27_spill]] }
 0x179   : > { %p31_p11 = scmp.ge.s32.totalorder %s34_s12, 4   ;;  %s1792_s28 = sld [smem:[#allocation33_spill]] }
 0x17a   : > { %s1793_s15 = sld [smem:[#allocation34_spill]]  ;;  %s1797_s1 = smov %s1317_s27 }
 0x17b   : > { %s1794_s22 = sld [smem:[#allocation28_spill]]  ;;  %s1799_s29 = smov %s1329_s30 }
 0x17c   : > { %s1795_s9 = sld [smem:[#allocation32_spill]]  ;;  %s1800_s30 = smov %s1333_s6 }
 0x17d   : > { %s1796_s16 = sld [smem:[#allocation30_spill]]  ;;  %s1802_s7 = smov %s1341_s8 }
 0x17e   : > { %s1798_s27 = smov %s1791_s13  ;;  %s1804_s10 = smov %s1353_s11 }
 0x17f   :  { %33 = sbr.rel (!%p31_p11) target bundleno = 37 (0x25), region = 114 }
 0x180   : > { %s1801_s6 = smov %s1793_s15 }
 0x181   : > { %s1803_s8 = smov %s1794_s22 }
 0x183   : > { %s1805_s11 = smov %s1796_s16 }
 0x184   :  { %811 = vsyncpa [#allocation6], 1 }
 0x185   :  { %813 = vsyncpa [#allocation6 + $0x1], 1 }
 0x186   :  { %814 = vsyncpa [#allocation9], 1 }
 0x187   :  { %816 = vsyncpa [#allocation9 + $0x1], 1 }
 0x188   :  { %817 = vsyncpa [#allocation7], 1 }
 0x189   :  { %819 = vsyncpa [#allocation7 + $0x1], 1 }

</bundles_post_ra>
